<compile_context>
chip_gen: v5e
topology: v5e:2x2
jax: 0.10.0
libtpu: 0.0.40
codegen_flags: <defaults>
</compile_context>

<pallas_src>
import jax
import jax.numpy as jnp
from jax.experimental import pallas as pl
from jax.experimental.pallas import tpu as pltpu


def ndd_lstm_kernel(x_ref, wih_ref, whh_ref, b_ref, wfc_ref, bfc_ref, out_ref):
    TB, D = x_ref.shape                  # x is time-major flat: row t*B + b
    H = whh_ref.shape[0]
    B = out_ref.shape[0]
    T = TB // B

    # ---- hoisted input projection: one MXU call covers all T time steps ----
    x_proj = (jnp.dot(x_ref[...], wih_ref[...],
                      preferred_element_type=jnp.float32)
              + b_ref[...])              # (T*B, 4H), both biases folded in once

    whh = whh_ref[...]                   # (H, 4H) resident across the recurrence

    h = jnp.zeros((B, H), jnp.float32)
    c = jnp.zeros((B, H), jnp.float32)

    # ---- recurrence, fully unrolled (T is small & static) ------------------
    # Only h @ W_hh^T + elementwise gate math remains on the serial chain.
    # For large T, switch to lax.fori_loop over a (T, B, 4H) VMEM scratch.
    for t in range(T):
        gates = (x_proj[t * B:(t + 1) * B, :]
                 + jnp.dot(h, whh, preferred_element_type=jnp.float32))  # (B, 4H)

        # Full-width EUP activations over all 4H lanes, then static lane slices.
        sig = jax.nn.sigmoid(gates)
        tnh = jnp.tanh(gates)
        i_g = sig[:, 0 * H:1 * H]
        f_g = sig[:, 1 * H:2 * H]
        g_g = tnh[:, 2 * H:3 * H]
        o_g = sig[:, 3 * H:4 * H]

        c = f_g * c + i_g * g_g
        h = o_g * jnp.tanh(c)

    # ---- final Linear on last hidden state (lane-dense padded output) ------
    out_ref[...] = (jnp.dot(h, wfc_ref[...], preferred_element_type=jnp.float32)
                    + bfc_ref[...])


def ndd_forward(x, params):
    """x: (B, T, input_size) float32, batch-first like the PyTorch module."""
    wih, whh, bih, bhh, wfc, bfc = params
    B, T, D = x.shape
    H = whh.shape[1]
    Dp = ((D + 127) // 128) * 128        # lane-dense output width

    # Time-major flat slab: row index t*B + b.  Transpose/reshape happen once
    # in XLA outside the kernel; the kernel then needs no reshapes at all.
    x_tb = jnp.transpose(x, (1, 0, 2)).reshape(T * B, D)

    wih_t = jnp.transpose(wih)                       # (D, 4H)
    whh_t = jnp.transpose(whh)                       # (H, 4H)
    b = (bih + bhh).reshape(1, 4 * H)                # (1, 4H)
    # Zero-pad fc weight/bias columns to a multiple of 128 -> unmasked stores.
    wfc_t = jnp.zeros((H, Dp), jnp.float32).at[:, :D].set(jnp.transpose(wfc))
    bfc_p = jnp.zeros((1, Dp), jnp.float32).at[:, :D].set(bfc.reshape(1, D))

    out_padded = pl.pallas_call(
        ndd_lstm_kernel,
        out_shape=jax.ShapeDtypeStruct((B, Dp), jnp.float32),
        grid_spec=pltpu.PrefetchScalarGridSpec(
            num_scalar_prefetch=0,
            grid=(1,),                                # single invocation; loop is in-kernel
            in_specs=[
                pl.BlockSpec((T * B, D), lambda i: (0, 0)),      # x (time-major flat)
                pl.BlockSpec((D, 4 * H), lambda i: (0, 0)),      # W_ih^T
                pl.BlockSpec((H, 4 * H), lambda i: (0, 0)),      # W_hh^T
                pl.BlockSpec((1, 4 * H), lambda i: (0, 0)),      # b_ih + b_hh
                pl.BlockSpec((H, Dp), lambda i: (0, 0)),         # W_fc^T (padded)
                pl.BlockSpec((1, Dp), lambda i: (0, 0)),         # b_fc (padded)
            ],
            out_specs=pl.BlockSpec((B, Dp), lambda i: (0, 0)),
        ),
        compiler_params=pltpu.CompilerParams(
            dimension_semantics=("arbitrary",)),
    )(x_tb, wih_t, whh_t, b, wfc_t, bfc_p)

    return out_padded[:, :D]


def ndd_reference(x, params):
    """Pure-JAX reference matching torch.nn.LSTM(batch_first=True) + Linear."""
    wih, whh, bih, bhh, wfc, bfc = params
    B, T, D = x.shape
    H = whh.shape[1]

    def step(carry, x_t):
        h, c = carry
        gates = x_t @ wih.T + bih + h @ whh.T + bhh
        i = jax.nn.sigmoid(gates[:, :H])
        f = jax.nn.sigmoid(gates[:, H:2 * H])
        g = jnp.tanh(gates[:, 2 * H:3 * H])
        o = jax.nn.sigmoid(gates[:, 3 * H:])
        c = f * c + i * g
        h = o * jnp.tanh(c)
        return (h, c), None

    h0 = jnp.zeros((B, H), jnp.float32)
    (h_last, _), _ = jax.lax.scan(step, (h0, h0), jnp.transpose(x, (1, 0, 2)))
    return h_last @ wfc.T + bfc


def init_params(key, input_size, hidden_size):
    """Deterministic synthetic weights with PyTorch LSTM/Linear shapes."""
    ks = jax.random.split(key, 6)
    k = 1.0 / jnp.sqrt(hidden_size)
    wih = jax.random.uniform(ks[0], (4 * hidden_size, input_size), jnp.float32, -k, k)
    whh = jax.random.uniform(ks[1], (4 * hidden_size, hidden_size), jnp.float32, -k, k)
    bih = jax.random.uniform(ks[2], (4 * hidden_size,), jnp.float32, -k, k)
    bhh = jax.random.uniform(ks[3], (4 * hidden_size,), jnp.float32, -k, k)
    wfc = jax.random.uniform(ks[4], (input_size, hidden_size), jnp.float32, -k, k)
    bfc = jax.random.uniform(ks[5], (input_size,), jnp.float32, -k, k)
    return (wih, whh, bih, bhh, wfc, bfc)


if __name__ == "__main__":
    B, T, INPUT_SIZE, HIDDEN_SIZE = 2, 8, 32, 32

    key = jax.random.PRNGKey(0)
    kx, kp = jax.random.split(key)
    x = jax.random.normal(kx, (B, T, INPUT_SIZE), jnp.float32)
    params = init_params(kp, INPUT_SIZE, HIDDEN_SIZE)

    out = jax.block_until_ready(ndd_forward(x, params))
    ref = jax.block_until_ready(ndd_reference(x, params))

    assert out.shape == (B, INPUT_SIZE)
    assert jnp.allclose(out, ref, atol=1e-4, rtol=1e-4), "mismatch vs reference"

    print("KERNEL_OK")
</pallas_src>

<mosaic_0001>
module attributes {stable_mosaic.version = 11 : i64} {
  func.func @ndd_lstm_kernel(%arg0: i32, %arg1: memref<16x32xf32, #tpu.memory_space<vmem>>, %arg2: memref<32x128xf32, #tpu.memory_space<vmem>>, %arg3: memref<32x128xf32, #tpu.memory_space<vmem>>, %arg4: memref<1x128xf32, #tpu.memory_space<vmem>>, %arg5: memref<32x128xf32, #tpu.memory_space<vmem>>, %arg6: memref<1x128xf32, #tpu.memory_space<vmem>>, %arg7: memref<2x128xf32, #tpu.memory_space<vmem>>) attributes {dimension_semantics = [#tpu.dimension_semantics<arbitrary>], iteration_bounds = array<i64: 1>, scalar_prefetch = 0 : i64, scratch_operands = 0 : i64, tpu.core_type = #tpu.core_type<tc>, window_params = [{pipeline_mode = #tpu.pipeline_mode<synchronous>, transform_indices = @transform_0, window_bounds = array<i64: 16, 32>}, {pipeline_mode = #tpu.pipeline_mode<synchronous>, transform_indices = @transform_1, window_bounds = array<i64: 32, 128>}, {pipeline_mode = #tpu.pipeline_mode<synchronous>, transform_indices = @transform_2, window_bounds = array<i64: 32, 128>}, {pipeline_mode = #tpu.pipeline_mode<synchronous>, transform_indices = @transform_3, window_bounds = array<i64: 1, 128>}, {pipeline_mode = #tpu.pipeline_mode<synchronous>, transform_indices = @transform_4, window_bounds = array<i64: 32, 128>}, {pipeline_mode = #tpu.pipeline_mode<synchronous>, transform_indices = @transform_5, window_bounds = array<i64: 1, 128>}, {pipeline_mode = #tpu.pipeline_mode<synchronous>, transform_indices = @transform_6, window_bounds = array<i64: 2, 128>}]} {
    %c0 = arith.constant 0 : index
    %c0_0 = arith.constant 0 : index
    %0 = vector.load %arg1[%c0, %c0_0] : memref<16x32xf32, #tpu.memory_space<vmem>>, vector<16x32xf32>
    %c0_1 = arith.constant 0 : index
    %c0_2 = arith.constant 0 : index
    %1 = vector.load %arg2[%c0_1, %c0_2] : memref<32x128xf32, #tpu.memory_space<vmem>>, vector<32x128xf32>
    %cst = arith.constant dense<0.000000e+00> : vector<16x128xf32>
    %2 = tpu.matmul %0, %1, %cst {dimension_numbers = #tpu.dot_dimension_numbers<[1], [0], [0], [1], [0, 0, 1, 1], [], []>} : vector<16x32xf32>, vector<32x128xf32>, vector<16x128xf32> -> vector<16x128xf32>
    %c0_3 = arith.constant 0 : index
    %c0_4 = arith.constant 0 : index
    %3 = vector.load %arg4[%c0_3, %c0_4] : memref<1x128xf32, #tpu.memory_space<vmem>>, vector<1x128xf32>
    %4 = vector.broadcast %3 : vector<1x128xf32> to vector<16x128xf32>
    %5 = arith.addf %2, %4 : vector<16x128xf32>
    %c0_5 = arith.constant 0 : index
    %c0_6 = arith.constant 0 : index
    %6 = vector.load %arg3[%c0_5, %c0_6] : memref<32x128xf32, #tpu.memory_space<vmem>>, vector<32x128xf32>
    %cst_7 = arith.constant 0.000000e+00 : f32
    %7 = vector.broadcast %cst_7 : f32 to vector<2x32xf32>
    %cst_8 = arith.constant 0.000000e+00 : f32
    %8 = vector.broadcast %cst_8 : f32 to vector<2x32xf32>
    %9 = vector.extract_strided_slice %5 {offsets = [0, 0], sizes = [2, 128], strides = [1, 1]} : vector<16x128xf32> to vector<2x128xf32>
    %cst_9 = arith.constant dense<0.000000e+00> : vector<2x128xf32>
    %10 = tpu.matmul %7, %6, %cst_9 {dimension_numbers = #tpu.dot_dimension_numbers<[1], [0], [0], [1], [0, 0, 1, 1], [], []>} : vector<2x32xf32>, vector<32x128xf32>, vector<2x128xf32> -> vector<2x128xf32>
    %11 = arith.addf %9, %10 : vector<2x128xf32>
    %12 = arith.negf %11 : vector<2x128xf32>
    %13 = math.exp %12 : vector<2x128xf32>
    %cst_10 = arith.constant 1.000000e+00 : f32
    %14 = vector.broadcast %cst_10 : f32 to vector<2x128xf32>
    %15 = arith.addf %14, %13 : vector<2x128xf32>
    %16 = arith.divf %14, %15 : vector<2x128xf32>
    %17 = math.tanh %11 : vector<2x128xf32>
    %18 = vector.extract_strided_slice %16 {offsets = [0, 0], sizes = [2, 32], strides = [1, 1]} : vector<2x128xf32> to vector<2x32xf32>
    %19 = vector.extract_strided_slice %16 {offsets = [0, 32], sizes = [2, 32], strides = [1, 1]} : vector<2x128xf32> to vector<2x32xf32>
    %20 = vector.extract_strided_slice %17 {offsets = [0, 64], sizes = [2, 32], strides = [1, 1]} : vector<2x128xf32> to vector<2x32xf32>
    %21 = vector.extract_strided_slice %16 {offsets = [0, 96], sizes = [2, 32], strides = [1, 1]} : vector<2x128xf32> to vector<2x32xf32>
    %22 = arith.mulf %19, %8 : vector<2x32xf32>
    %23 = arith.mulf %18, %20 : vector<2x32xf32>
    %24 = arith.addf %22, %23 : vector<2x32xf32>
    %25 = math.tanh %24 : vector<2x32xf32>
    %26 = arith.mulf %21, %25 : vector<2x32xf32>
    %27 = vector.extract_strided_slice %5 {offsets = [2, 0], sizes = [2, 128], strides = [1, 1]} : vector<16x128xf32> to vector<2x128xf32>
    %cst_11 = arith.constant dense<0.000000e+00> : vector<2x128xf32>
    %28 = tpu.matmul %26, %6, %cst_11 {dimension_numbers = #tpu.dot_dimension_numbers<[1], [0], [0], [1], [0, 0, 1, 1], [], []>} : vector<2x32xf32>, vector<32x128xf32>, vector<2x128xf32> -> vector<2x128xf32>
    %29 = arith.addf %27, %28 : vector<2x128xf32>
    %30 = arith.negf %29 : vector<2x128xf32>
    %31 = math.exp %30 : vector<2x128xf32>
    %cst_12 = arith.constant 1.000000e+00 : f32
    %32 = vector.broadcast %cst_12 : f32 to vector<2x128xf32>
    %33 = arith.addf %32, %31 : vector<2x128xf32>
    %34 = arith.divf %32, %33 : vector<2x128xf32>
    %35 = math.tanh %29 : vector<2x128xf32>
    %36 = vector.extract_strided_slice %34 {offsets = [0, 0], sizes = [2, 32], strides = [1, 1]} : vector<2x128xf32> to vector<2x32xf32>
    %37 = vector.extract_strided_slice %34 {offsets = [0, 32], sizes = [2, 32], strides = [1, 1]} : vector<2x128xf32> to vector<2x32xf32>
    %38 = vector.extract_strided_slice %35 {offsets = [0, 64], sizes = [2, 32], strides = [1, 1]} : vector<2x128xf32> to vector<2x32xf32>
    %39 = vector.extract_strided_slice %34 {offsets = [0, 96], sizes = [2, 32], strides = [1, 1]} : vector<2x128xf32> to vector<2x32xf32>
    %40 = arith.mulf %37, %24 : vector<2x32xf32>
    %41 = arith.mulf %36, %38 : vector<2x32xf32>
    %42 = arith.addf %40, %41 : vector<2x32xf32>
    %43 = math.tanh %42 : vector<2x32xf32>
    %44 = arith.mulf %39, %43 : vector<2x32xf32>
    %45 = vector.extract_strided_slice %5 {offsets = [4, 0], sizes = [2, 128], strides = [1, 1]} : vector<16x128xf32> to vector<2x128xf32>
    %cst_13 = arith.constant dense<0.000000e+00> : vector<2x128xf32>
    %46 = tpu.matmul %44, %6, %cst_13 {dimension_numbers = #tpu.dot_dimension_numbers<[1], [0], [0], [1], [0, 0, 1, 1], [], []>} : vector<2x32xf32>, vector<32x128xf32>, vector<2x128xf32> -> vector<2x128xf32>
    %47 = arith.addf %45, %46 : vector<2x128xf32>
    %48 = arith.negf %47 : vector<2x128xf32>
    %49 = math.exp %48 : vector<2x128xf32>
    %cst_14 = arith.constant 1.000000e+00 : f32
    %50 = vector.broadcast %cst_14 : f32 to vector<2x128xf32>
    %51 = arith.addf %50, %49 : vector<2x128xf32>
    %52 = arith.divf %50, %51 : vector<2x128xf32>
    %53 = math.tanh %47 : vector<2x128xf32>
    %54 = vector.extract_strided_slice %52 {offsets = [0, 0], sizes = [2, 32], strides = [1, 1]} : vector<2x128xf32> to vector<2x32xf32>
    %55 = vector.extract_strided_slice %52 {offsets = [0, 32], sizes = [2, 32], strides = [1, 1]} : vector<2x128xf32> to vector<2x32xf32>
    %56 = vector.extract_strided_slice %53 {offsets = [0, 64], sizes = [2, 32], strides = [1, 1]} : vector<2x128xf32> to vector<2x32xf32>
    %57 = vector.extract_strided_slice %52 {offsets = [0, 96], sizes = [2, 32], strides = [1, 1]} : vector<2x128xf32> to vector<2x32xf32>
    %58 = arith.mulf %55, %42 : vector<2x32xf32>
    %59 = arith.mulf %54, %56 : vector<2x32xf32>
    %60 = arith.addf %58, %59 : vector<2x32xf32>
    %61 = math.tanh %60 : vector<2x32xf32>
    %62 = arith.mulf %57, %61 : vector<2x32xf32>
    %63 = vector.extract_strided_slice %5 {offsets = [6, 0], sizes = [2, 128], strides = [1, 1]} : vector<16x128xf32> to vector<2x128xf32>
    %cst_15 = arith.constant dense<0.000000e+00> : vector<2x128xf32>
    %64 = tpu.matmul %62, %6, %cst_15 {dimension_numbers = #tpu.dot_dimension_numbers<[1], [0], [0], [1], [0, 0, 1, 1], [], []>} : vector<2x32xf32>, vector<32x128xf32>, vector<2x128xf32> -> vector<2x128xf32>
    %65 = arith.addf %63, %64 : vector<2x128xf32>
    %66 = arith.negf %65 : vector<2x128xf32>
    %67 = math.exp %66 : vector<2x128xf32>
    %cst_16 = arith.constant 1.000000e+00 : f32
    %68 = vector.broadcast %cst_16 : f32 to vector<2x128xf32>
    %69 = arith.addf %68, %67 : vector<2x128xf32>
    %70 = arith.divf %68, %69 : vector<2x128xf32>
    %71 = math.tanh %65 : vector<2x128xf32>
    %72 = vector.extract_strided_slice %70 {offsets = [0, 0], sizes = [2, 32], strides = [1, 1]} : vector<2x128xf32> to vector<2x32xf32>
    %73 = vector.extract_strided_slice %70 {offsets = [0, 32], sizes = [2, 32], strides = [1, 1]} : vector<2x128xf32> to vector<2x32xf32>
    %74 = vector.extract_strided_slice %71 {offsets = [0, 64], sizes = [2, 32], strides = [1, 1]} : vector<2x128xf32> to vector<2x32xf32>
    %75 = vector.extract_strided_slice %70 {offsets = [0, 96], sizes = [2, 32], strides = [1, 1]} : vector<2x128xf32> to vector<2x32xf32>
    %76 = arith.mulf %73, %60 : vector<2x32xf32>
    %77 = arith.mulf %72, %74 : vector<2x32xf32>
    %78 = arith.addf %76, %77 : vector<2x32xf32>
    %79 = math.tanh %78 : vector<2x32xf32>
    %80 = arith.mulf %75, %79 : vector<2x32xf32>
    %81 = vector.extract_strided_slice %5 {offsets = [8, 0], sizes = [2, 128], strides = [1, 1]} : vector<16x128xf32> to vector<2x128xf32>
    %cst_17 = arith.constant dense<0.000000e+00> : vector<2x128xf32>
    %82 = tpu.matmul %80, %6, %cst_17 {dimension_numbers = #tpu.dot_dimension_numbers<[1], [0], [0], [1], [0, 0, 1, 1], [], []>} : vector<2x32xf32>, vector<32x128xf32>, vector<2x128xf32> -> vector<2x128xf32>
    %83 = arith.addf %81, %82 : vector<2x128xf32>
    %84 = arith.negf %83 : vector<2x128xf32>
    %85 = math.exp %84 : vector<2x128xf32>
    %cst_18 = arith.constant 1.000000e+00 : f32
    %86 = vector.broadcast %cst_18 : f32 to vector<2x128xf32>
    %87 = arith.addf %86, %85 : vector<2x128xf32>
    %88 = arith.divf %86, %87 : vector<2x128xf32>
    %89 = math.tanh %83 : vector<2x128xf32>
    %90 = vector.extract_strided_slice %88 {offsets = [0, 0], sizes = [2, 32], strides = [1, 1]} : vector<2x128xf32> to vector<2x32xf32>
    %91 = vector.extract_strided_slice %88 {offsets = [0, 32], sizes = [2, 32], strides = [1, 1]} : vector<2x128xf32> to vector<2x32xf32>
    %92 = vector.extract_strided_slice %89 {offsets = [0, 64], sizes = [2, 32], strides = [1, 1]} : vector<2x128xf32> to vector<2x32xf32>
    %93 = vector.extract_strided_slice %88 {offsets = [0, 96], sizes = [2, 32], strides = [1, 1]} : vector<2x128xf32> to vector<2x32xf32>
    %94 = arith.mulf %91, %78 : vector<2x32xf32>
    %95 = arith.mulf %90, %92 : vector<2x32xf32>
    %96 = arith.addf %94, %95 : vector<2x32xf32>
    %97 = math.tanh %96 : vector<2x32xf32>
    %98 = arith.mulf %93, %97 : vector<2x32xf32>
    %99 = vector.extract_strided_slice %5 {offsets = [10, 0], sizes = [2, 128], strides = [1, 1]} : vector<16x128xf32> to vector<2x128xf32>
    %cst_19 = arith.constant dense<0.000000e+00> : vector<2x128xf32>
    %100 = tpu.matmul %98, %6, %cst_19 {dimension_numbers = #tpu.dot_dimension_numbers<[1], [0], [0], [1], [0, 0, 1, 1], [], []>} : vector<2x32xf32>, vector<32x128xf32>, vector<2x128xf32> -> vector<2x128xf32>
    %101 = arith.addf %99, %100 : vector<2x128xf32>
    %102 = arith.negf %101 : vector<2x128xf32>
    %103 = math.exp %102 : vector<2x128xf32>
    %cst_20 = arith.constant 1.000000e+00 : f32
    %104 = vector.broadcast %cst_20 : f32 to vector<2x128xf32>
    %105 = arith.addf %104, %103 : vector<2x128xf32>
    %106 = arith.divf %104, %105 : vector<2x128xf32>
    %107 = math.tanh %101 : vector<2x128xf32>
    %108 = vector.extract_strided_slice %106 {offsets = [0, 0], sizes = [2, 32], strides = [1, 1]} : vector<2x128xf32> to vector<2x32xf32>
    %109 = vector.extract_strided_slice %106 {offsets = [0, 32], sizes = [2, 32], strides = [1, 1]} : vector<2x128xf32> to vector<2x32xf32>
    %110 = vector.extract_strided_slice %107 {offsets = [0, 64], sizes = [2, 32], strides = [1, 1]} : vector<2x128xf32> to vector<2x32xf32>
    %111 = vector.extract_strided_slice %106 {offsets = [0, 96], sizes = [2, 32], strides = [1, 1]} : vector<2x128xf32> to vector<2x32xf32>
    %112 = arith.mulf %109, %96 : vector<2x32xf32>
    %113 = arith.mulf %108, %110 : vector<2x32xf32>
    %114 = arith.addf %112, %113 : vector<2x32xf32>
    %115 = math.tanh %114 : vector<2x32xf32>
    %116 = arith.mulf %111, %115 : vector<2x32xf32>
    %117 = vector.extract_strided_slice %5 {offsets = [12, 0], sizes = [2, 128], strides = [1, 1]} : vector<16x128xf32> to vector<2x128xf32>
    %cst_21 = arith.constant dense<0.000000e+00> : vector<2x128xf32>
    %118 = tpu.matmul %116, %6, %cst_21 {dimension_numbers = #tpu.dot_dimension_numbers<[1], [0], [0], [1], [0, 0, 1, 1], [], []>} : vector<2x32xf32>, vector<32x128xf32>, vector<2x128xf32> -> vector<2x128xf32>
    %119 = arith.addf %117, %118 : vector<2x128xf32>
    %120 = arith.negf %119 : vector<2x128xf32>
    %121 = math.exp %120 : vector<2x128xf32>
    %cst_22 = arith.constant 1.000000e+00 : f32
    %122 = vector.broadcast %cst_22 : f32 to vector<2x128xf32>
    %123 = arith.addf %122, %121 : vector<2x128xf32>
    %124 = arith.divf %122, %123 : vector<2x128xf32>
    %125 = math.tanh %119 : vector<2x128xf32>
    %126 = vector.extract_strided_slice %124 {offsets = [0, 0], sizes = [2, 32], strides = [1, 1]} : vector<2x128xf32> to vector<2x32xf32>
    %127 = vector.extract_strided_slice %124 {offsets = [0, 32], sizes = [2, 32], strides = [1, 1]} : vector<2x128xf32> to vector<2x32xf32>
    %128 = vector.extract_strided_slice %125 {offsets = [0, 64], sizes = [2, 32], strides = [1, 1]} : vector<2x128xf32> to vector<2x32xf32>
    %129 = vector.extract_strided_slice %124 {offsets = [0, 96], sizes = [2, 32], strides = [1, 1]} : vector<2x128xf32> to vector<2x32xf32>
    %130 = arith.mulf %127, %114 : vector<2x32xf32>
    %131 = arith.mulf %126, %128 : vector<2x32xf32>
    %132 = arith.addf %130, %131 : vector<2x32xf32>
    %133 = math.tanh %132 : vector<2x32xf32>
    %134 = arith.mulf %129, %133 : vector<2x32xf32>
    %135 = vector.extract_strided_slice %5 {offsets = [14, 0], sizes = [2, 128], strides = [1, 1]} : vector<16x128xf32> to vector<2x128xf32>
    %cst_23 = arith.constant dense<0.000000e+00> : vector<2x128xf32>
    %136 = tpu.matmul %134, %6, %cst_23 {dimension_numbers = #tpu.dot_dimension_numbers<[1], [0], [0], [1], [0, 0, 1, 1], [], []>} : vector<2x32xf32>, vector<32x128xf32>, vector<2x128xf32> -> vector<2x128xf32>
    %137 = arith.addf %135, %136 : vector<2x128xf32>
    %138 = arith.negf %137 : vector<2x128xf32>
    %139 = math.exp %138 : vector<2x128xf32>
    %cst_24 = arith.constant 1.000000e+00 : f32
    %140 = vector.broadcast %cst_24 : f32 to vector<2x128xf32>
    %141 = arith.addf %140, %139 : vector<2x128xf32>
    %142 = arith.divf %140, %141 : vector<2x128xf32>
    %143 = math.tanh %137 : vector<2x128xf32>
    %144 = vector.extract_strided_slice %142 {offsets = [0, 0], sizes = [2, 32], strides = [1, 1]} : vector<2x128xf32> to vector<2x32xf32>
    %145 = vector.extract_strided_slice %142 {offsets = [0, 32], sizes = [2, 32], strides = [1, 1]} : vector<2x128xf32> to vector<2x32xf32>
    %146 = vector.extract_strided_slice %143 {offsets = [0, 64], sizes = [2, 32], strides = [1, 1]} : vector<2x128xf32> to vector<2x32xf32>
    %147 = vector.extract_strided_slice %142 {offsets = [0, 96], sizes = [2, 32], strides = [1, 1]} : vector<2x128xf32> to vector<2x32xf32>
    %148 = arith.mulf %145, %132 : vector<2x32xf32>
    %149 = arith.mulf %144, %146 : vector<2x32xf32>
    %150 = arith.addf %148, %149 : vector<2x32xf32>
    %151 = math.tanh %150 : vector<2x32xf32>
    %152 = arith.mulf %147, %151 : vector<2x32xf32>
    %c0_25 = arith.constant 0 : index
    %c0_26 = arith.constant 0 : index
    %153 = vector.load %arg5[%c0_25, %c0_26] : memref<32x128xf32, #tpu.memory_space<vmem>>, vector<32x128xf32>
    %cst_27 = arith.constant dense<0.000000e+00> : vector<2x128xf32>
    %154 = tpu.matmul %152, %153, %cst_27 {dimension_numbers = #tpu.dot_dimension_numbers<[1], [0], [0], [1], [0, 0, 1, 1], [], []>} : vector<2x32xf32>, vector<32x128xf32>, vector<2x128xf32> -> vector<2x128xf32>
    %c0_28 = arith.constant 0 : index
    %c0_29 = arith.constant 0 : index
    %155 = vector.load %arg6[%c0_28, %c0_29] : memref<1x128xf32, #tpu.memory_space<vmem>>, vector<1x128xf32>
    %156 = vector.broadcast %155 : vector<1x128xf32> to vector<2x128xf32>
    %157 = arith.addf %154, %156 : vector<2x128xf32>
    %c0_30 = arith.constant 0 : index
    %c0_31 = arith.constant 0 : index
    %158 = vector.load %arg7[%c0_30, %c0_31] : memref<2x128xf32, #tpu.memory_space<vmem>>, vector<2x128xf32>
    tpu.vector_store %arg7[%c0_30, %c0_31], %157 {strides = array<i32>} : memref<2x128xf32, #tpu.memory_space<vmem>>, vector<2x128xf32>,
    return
  }
  func.func @transform_0(%arg0: i32) -> (i32, i32) {
    %c0_i32 = arith.constant 0 : i32
    %c0_i32_0 = arith.constant 0 : i32
    %c0_i32_1 = arith.constant 0 : i32
    return %c0_i32, %c0_i32_0 : i32, i32
  }
  func.func @transform_1(%arg0: i32) -> (i32, i32) {
    %c0_i32 = arith.constant 0 : i32
    %c0_i32_0 = arith.constant 0 : i32
    %c0_i32_1 = arith.constant 0 : i32
    return %c0_i32, %c0_i32_0 : i32, i32
  }
  func.func @transform_2(%arg0: i32) -> (i32, i32) {
    %c0_i32 = arith.constant 0 : i32
    %c0_i32_0 = arith.constant 0 : i32
    %c0_i32_1 = arith.constant 0 : i32
    return %c0_i32, %c0_i32_0 : i32, i32
  }
  func.func @transform_3(%arg0: i32) -> (i32, i32) {
    %c0_i32 = arith.constant 0 : i32
    %c0_i32_0 = arith.constant 0 : i32
    %c0_i32_1 = arith.constant 0 : i32
    return %c0_i32, %c0_i32_0 : i32, i32
  }
  func.func @transform_4(%arg0: i32) -> (i32, i32) {
    %c0_i32 = arith.constant 0 : i32
    %c0_i32_0 = arith.constant 0 : i32
    %c0_i32_1 = arith.constant 0 : i32
    return %c0_i32, %c0_i32_0 : i32, i32
  }
  func.func @transform_5(%arg0: i32) -> (i32, i32) {
    %c0_i32 = arith.constant 0 : i32
    %c0_i32_0 = arith.constant 0 : i32
    %c0_i32_1 = arith.constant 0 : i32
    return %c0_i32, %c0_i32_0 : i32, i32
  }
  func.func @transform_6(%arg0: i32) -> (i32, i32) {
    %c0_i32 = arith.constant 0 : i32
    %c0_i32_0 = arith.constant 0 : i32
    %c0_i32_1 = arith.constant 0 : i32
    return %c0_i32, %c0_i32_0 : i32, i32
  }
}

</mosaic_0001>

<bundles_post_ra>
// kernel: tpu_custom_call.1
= control target key start
LH: loop header
LB: loop body
LE: loop exit
PB: predicated region body
PF: predicated region fallthrough
CT: control target
= control target key end

     0   :  { %11 = vsyncpa [#allocation3], 0  ;;  %s1077_s0 = inlined_call_operand.hbm [shape: f32[16,32], index: 0, kind: input, shape index: {}]   ;;  %s1078_s1 = inlined_call_operand.hbm [shape: f32[32,128], index: 1, kind: input, shape index: {}]   ;;  %s1079_s2 = inlined_call_operand.hbm [shape: f32[32,128], index: 2, kind: input, shape index: {}]   ;;  %s1080_s3 = inlined_call_operand.vmem [shape: f32[1,128], index: 3, kind: input, shape index: {}]   ;;  %s1081_s4 = inlined_call_operand.hbm [shape: f32[32,128], index: 4, kind: input, shape index: {}]   ;;  %s1082_s5 = inlined_call_operand.vmem [shape: f32[1,128], index: 5, kind: input, shape index: {}]   ;;  %s1083_s6 = inlined_call_operand.hbm [shape: f32[2,128], index: 6, kind: output, shape index: {}]  }
   0x1   :  { %12 = vsyncpa [#allocation6], 0 }
   0x2   :  { %13 = vsyncpa [#allocation9], 0 }
   0x3   :  { %14 = vsyncpa [#allocation4], 0  ;;  %s32_s23 = sshll.u32 %s1078_s1, 4  ;;  %s953_s24 = smov [#allocation5]   ;;  %s33_s23 = int_to_ptr.hbm [resolvable:$true] %s32_s23 }
   0x4   :  { %s34_s25 = sshll.u32 %s953_s24, 4  ;;  %s19_s28 = sshll.u32 %s1077_s0, 4  ;;  %s35_s25 = int_to_ptr.vmem [resolvable:$true] %s34_s25  ;;  %s20_s28 = int_to_ptr.hbm [resolvable:$true] %s19_s28 }
   0x5   :  { %s954_s29 = smov 128   ;;  %s955_s30 = smov 8  }
   0x6   :  { %40 = dma.hbm_to_vmem [thread:$0]  %s33_s23, 512, %s35_s25, [#allocation6], %s954_s29, %s954_s29, %s955_s30  }
   0x7   :  { %s956_s7 = smov [#allocation2]   ;;  %s45_s11 = sshll.u32 %s1079_s2, 4  ;;  %s46_s11 = int_to_ptr.hbm [resolvable:$true] %s45_s11 }
   0x8   :  { %s21_s8 = sshll.u32 %s956_s7, 4  ;;  %s60_s13 = sshll.u32 %s1081_s4, 4  ;;  %s22_s8 = int_to_ptr.vmem [resolvable:$true] %s21_s8  ;;  %s61_s13 = int_to_ptr.hbm [resolvable:$true] %s60_s13 }
   0x9   :  { %27 = dma.hbm_to_vmem [thread:$0]  %s20_s28, 256, %s22_s8, [#allocation3], %s954_s29, %s954_s29, %s955_s30  }
   0xa   :  { %s957_s14 = smov [#allocation7]   ;;  %s958_s0 = smov [#allocation8]  }
   0xb   :  { %s47_s15 = sshll.u32 %s957_s14, 4  ;;  %s62_s16 = sshll.u32 %s958_s0, 4  ;;  %s48_s15 = int_to_ptr.vmem [resolvable:$true] %s47_s15  ;;  %s63_s16 = int_to_ptr.vmem [resolvable:$true] %s62_s16 }
   0xc   :  { %53 = dma.hbm_to_vmem [thread:$0]  %s46_s11, 512, %s48_s15, [#allocation6], %s954_s29, %s954_s29, %s955_s30  }
   0xd   :  { %68 = dma.hbm_to_vmem [thread:$0]  %s61_s13, 512, %s63_s16, [#allocation9], %s954_s29, %s954_s29, %s955_s30  }
   0xe   :  { %945 = dma.done.wait [#allocation3], 256  }
   0xf   :  { %946 = vsyncadd [#allocation3], 4294967040 }
  0x10   :  { %947 = dma.done.wait [#allocation6], 1024  }
  0x11   :  { %948 = vsyncadd [#allocation6], 4294966272 }
  0x12   :  { %949 = dma.done.wait [#allocation9], 512  }
  0x13   :  { %950 = vsyncadd [#allocation9], 4294966784  ;;  %v92_v0 = vld [vmem:[#allocation5 + $0x18] sm:$0xff]  ;;  %v91_v1 = vld [vmem:[#allocation5 + $0x10] sm:$0xff]  ;;  %vm97_vm0 = vcmask 261120   ;;  %v959_v9 = vmov 0.0  }
  0x14   :  { %v130_v2 = vld [vmem:[#allocation7 + $0x18] sm:$0xff]  ;;  %116 = vmatpush.msra.mxu0 %v92_v0  ;;  %v129_v3 = vld [vmem:[#allocation7 + $0x10] sm:$0xff]  ;;  %v90_v4 = vld [vmem:[#allocation5 + $0x8] sm:$0xff]  ;;  %s960_s17 = smov 64   ;;  %s962_s20 = smov [#allocation10]  }
  0x15   :  { %146 = vmatpush.msra.mxu1 %v130_v2  ;;  %v128_v5 = vld [vmem:[#allocation7 + $0x8] sm:$0xff]  ;;  %209 = vmatpush.msra.mxu2 %v130_v2  ;;  %v89_v6 = vld [vmem:[#allocation5] sm:$0xff]  ;;  %v87_v8 = vld [vmem:[#allocation2] sm:$0xff]  ;;  %s717_s21 = sshll.u32 %s962_s20, 4  ;;  %s719_s24 = sshll.u32 %s1083_s6, 4  ;;  %s718_s21 = int_to_ptr.vmem [resolvable:$true] %s717_s21  ;;  %s720_s24 = int_to_ptr.hbm [resolvable:$true] %s719_s24 }
  0x16   :  { %279 = vmatpush.msra.mxu3 %v130_v2  ;;  %117 = vmatpush.msra.mxu0 %v91_v1  ;;  %v127_v7 = vld [vmem:[#allocation7] sm:$0xff]  ;;  %v1014_v10 = vld [vmem:[%s1080_s3] ss:$0 sm:$0xff]  ;;  %s961_s3 = smov 32  }
  0x17   :  { %147 = vmatpush.msra.mxu1 %v129_v3  ;;  %210 = vmatpush.msra.mxu2 %v129_v3 }
  0x18   :  { %280 = vmatpush.msra.mxu3 %v129_v3  ;;  %118 = vmatpush.msra.mxu0 %v90_v4 }
  0x19   :  { %148 = vmatpush.msra.mxu1 %v128_v5  ;;  %211 = vmatpush.msra.mxu2 %v128_v5 }
  0x1a   :  { %281 = vmatpush.msra.mxu3 %v128_v5  ;;  %119 = vmatpush.msra.mxu0 %v89_v6 }
  0x1b   :  { %149 = vmatpush.msra.mxu1 %v127_v7  ;;  %731 = vmatmul.msk.f32.vlgmr.msra.gmra.mxu0 %vm97_vm0, %v87_v8 }
  0x1c   :  { %150 = vmatmul.f32.vlgmr.msra.gmra.mxu1 %v959_v9  ;;  %212 = vmatpush.msra.mxu2 %v127_v7 }
  0x1d   :  { %282 = vmatpush.msra.mxu3 %v127_v7  ;;  %349 = vmatpush.msrb.mxu1 %v130_v2 }
  0x1e   :  { %419 = vmatpush.msrb.mxu2 %v130_v2  ;;  %555 = vmatpush.msrb.mxu0 %v130_v2 }
  0x1f   :  { %485 = vmatpush.msrb.mxu3 %v130_v2  ;;  %350 = vmatpush.msrb.mxu1 %v129_v3 }
  0x20   :  { %420 = vmatpush.msrb.mxu2 %v129_v3  ;;  %556 = vmatpush.msrb.mxu0 %v129_v3 }
  0x21   :  { %486 = vmatpush.msrb.mxu3 %v129_v3  ;;  %351 = vmatpush.msrb.mxu1 %v128_v5 }
  0x22   :  { %421 = vmatpush.msrb.mxu2 %v128_v5  ;;  %557 = vmatpush.msrb.mxu0 %v128_v5 }
  0x23   :  { %487 = vmatpush.msrb.mxu3 %v128_v5  ;;  %352 = vmatpush.msrb.mxu1 %v127_v7 }
  0x24   :  { %422 = vmatpush.msrb.mxu2 %v127_v7  ;;  %558 = vmatpush.msrb.mxu0 %v127_v7 }
  0x25   :  { %488 = vmatpush.msrb.mxu3 %v127_v7  ;;  %625 = vmatpush.msra.mxu1 %v130_v2 }
  0x27   :  { %626 = vmatpush.msra.mxu1 %v129_v3 }
  0x29   :  { %627 = vmatpush.msra.mxu1 %v128_v5 }
  0x2b   :  { %628 = vmatpush.msra.mxu1 %v127_v7 }
  0x98   :  { %v121_v11 = vpop.f32.mrf.mxu0 }
  0x99   :  { %v151_v12 = vpop.f32.mrf.mxu1  ;;  %v1017_v13 = vadd.f32 %v1014_v10, %v121_v11 }
  0x9b   :  { %v154_v14 = vadd.f32 %v151_v12, %v1017_v13 }
  0x9d   :  { %761 = vtanh.f32 %v154_v14  ;;  %v733_v16 = vmul.f32 -1.442695, %v154_v14 }
  0x9f   :  { %763 = vpow2.f32 %v733_v16 }
  0xa3   :  { %v762_v15 = vpop.eup %761 }
  0xa4   :  { %177 = vrot.lane.b32.xlu0 %v762_v15, %s960_s17 }
  0xa5   :  { %v764_v17 = vpop.eup %763 }
  0xa6   :  { %v158_v18 = vadd.f32 1.0, %v764_v17 }
  0xa8   :  { %765 = vrcp.f32 %v158_v18  ;;  %v170_v24 = vand.u32 2147483648, %v158_v18  ;;  %vm164_vm2 = vweird.f32 %v158_v18  ;;  %v168_v25 = vand.u32 2147483647, %v158_v18 }
  0xaa   :  { %v171_v27 = vor.u32 1.1754944e-38, %v170_v24  ;;  %vm169_vm4 = vcmp.eq.f32.partialorder %v168_v25, 8.507059e+37 }
  0xae   :  { %v766_v19 = vpop.eup %765 }
  0xaf   :  { %v160_v20 = vmul.f32 %v766_v19, %v158_v18  ;;  %vm165_vm1 = vweird.f32 %v766_v19 }
  0xb0   :  { %vm166_vm3 = vmor %vm164_vm2, %vm165_vm1 }
  0xb1   :  { %v161_v21 = vsub.f32 1.0, %v160_v20 }
  0xb3   :  { %v162_v22 = vmul.f32 %v766_v19, %v161_v21 }
  0xb5   :  { %v163_v23 = vadd.f32 %v766_v19, %v162_v22 }
  0xb7   :  { %v167_v26 = vsel %vm166_vm3, %v766_v19, %v163_v23 }
  0xb8   :  { %v172_v29 = vsel %vm169_vm4, %v171_v27, %v167_v26 }
  0xb9   :  { %v175_v31 = vmul.f32 0.0, %v172_v29 }
 0x116   :  { %v178_v28 = vpop.permute.xlu0 %177 }
 0x117   :  { %v180_v30 = vmul.f32 %v178_v28, %v172_v29 }
 0x119   :  { %182 = vrot.lane.b32.xlu0 %v180_v30, %s961_s3 }
 0x18b   :  { %v183_v32 = vpop.permute.xlu0 %182 }
 0x18c   :  { %v185_v33 = vadd.f32 %v183_v32, %v175_v31 }
 0x18e   :  { %767 = vtanh.f32 %v185_v33  ;;  %v242_v57 = vrot.slane %v185_v33, 6 }
 0x194   :  { %v768_v34 = vpop.eup %767 }
 0x195   :  { %188 = vrot.lane.b32.xlu1 %v768_v34, %s960_s17 }
 0x207   :  { %v189_v35 = vpop.permute.xlu1 %188 }
 0x208   :  { %v191_v36 = vmul.f32 %v189_v35, %v172_v29 }
 0x20a   :  { %193 = vrot.lane.b32.xlu1 %v191_v36, %s961_s3 }
 0x27c   :  { %v194_v37 = vpop.permute.xlu1 %193 }
 0x27d   :  { %734 = vmatmul.msk.f32.vlgmr.msra.gmra.mxu2 %vm97_vm0, %v194_v37 }
 0x300   :  { %v214_v38 = vpop.f32.mrf.mxu2 }
 0x301   :  { %v218_v39 = vrot.slane %v214_v38, 6 }
 0x303   :  { %v220_v40 = vadd.f32 %v218_v39, %v1017_v13 }
 0x305   :  { %769 = vtanh.f32 %v220_v40  ;;  %v735_v42 = vmul.f32 -1.442695, %v220_v40 }
 0x307   :  { %771 = vpow2.f32 %v735_v42 }
 0x30b   :  { %v770_v41 = vpop.eup %769 }
 0x30c   :  { %246 = vrot.lane.b32.xlu2 %v770_v41, %s960_s17 }
 0x30d   :  { %v772_v43 = vpop.eup %771 }
 0x30e   :  { %v224_v44 = vadd.f32 1.0, %v772_v43 }
 0x310   :  { %773 = vrcp.f32 %v224_v44  ;;  %v236_v50 = vand.u32 2147483648, %v224_v44  ;;  %vm230_vm6 = vweird.f32 %v224_v44  ;;  %v234_v51 = vand.u32 2147483647, %v224_v44 }
 0x312   :  { %v237_v53 = vor.u32 1.1754944e-38, %v236_v50  ;;  %vm235_vm8 = vcmp.eq.f32.partialorder %v234_v51, 8.507059e+37 }
 0x316   :  { %v774_v45 = vpop.eup %773 }
 0x317   :  { %v226_v46 = vmul.f32 %v774_v45, %v224_v44  ;;  %vm231_vm5 = vweird.f32 %v774_v45 }
 0x318   :  { %vm232_vm7 = vmor %vm230_vm6, %vm231_vm5 }
 0x319   :  { %v227_v47 = vsub.f32 1.0, %v226_v46 }
 0x31b   :  { %v228_v48 = vmul.f32 %v774_v45, %v227_v47 }
 0x31d   :  { %v229_v49 = vadd.f32 %v774_v45, %v228_v48 }
 0x31f   :  { %v233_v52 = vsel %vm232_vm7, %v774_v45, %v229_v49 }
 0x320   :  { %v238_v55 = vsel %vm235_vm8, %v237_v53, %v233_v52 }
 0x321   :  { %v244_v58 = vmul.f32 %v242_v57, %v238_v55 }
 0x366   :  { %v247_v54 = vpop.permute.xlu2 %246 }
 0x367   :  { %v249_v56 = vmul.f32 %v247_v54, %v238_v55 }
 0x369   :  { %251 = vrot.lane.b32.xlu2 %v249_v56, %s961_s3 }
 0x3c3   :  { %v252_v59 = vpop.permute.xlu2 %251 }
 0x3c4   :  { %v254_v60 = vadd.f32 %v252_v59, %v244_v58  ;;  %v88_v58 = vld [vmem:[#allocation2 + $0x8] sm:$0xff] }
 0x3c5   :  { %732 = vmatmul.msk.f32.gmra.mxu0 %vm97_vm0, %v88_v58 }
 0x3c6   :  { %775 = vtanh.f32 %v254_v60  ;;  %v312_v23 = vrot.slane %v254_v60, 6 }
 0x3cc   :  { %v776_v61 = vpop.eup %775 }
 0x3cd   :  { %257 = vrot.lane.b32.xlu0 %v776_v61, %s960_s17 }
 0x43f   :  { %v258_v62 = vpop.permute.xlu0 %257 }
 0x440   :  { %v260_v63 = vmul.f32 %v258_v62, %v238_v55 }
 0x442   :  { %v262_v0 = vrot.slane %v260_v63, 2  ;;  %v124_v60 = vpop.f32.mrf.mxu0 }
 0x443   :  { %v1045_v61 = vadd.f32 %v1014_v10, %v124_v60 }
 0x444   :  { %263 = vrot.lane.b32.xlu1 %v262_v0, %s961_s3 }
 0x4b6   :  { %v264_v1 = vpop.permute.xlu1 %263 }
 0x4b7   :  { %736 = vmatmul.msk.f32.vlgmr.msra.gmra.mxu3 %vm97_vm0, %v264_v1 }
 0x53a   :  { %v284_v2 = vpop.f32.mrf.mxu3 }
 0x53b   :  { %v288_v3 = vrot.slane %v284_v2, 4 }
 0x53d   :  { %v290_v4 = vadd.f32 %v288_v3, %v1017_v13 }
 0x53f   :  { %777 = vtanh.f32 %v290_v4  ;;  %v737_v6 = vmul.f32 -1.442695, %v290_v4 }
 0x541   :  { %779 = vpow2.f32 %v737_v6 }
 0x545   :  { %v778_v5 = vpop.eup %777 }
 0x546   :  { %316 = vrot.lane.b32.xlu2 %v778_v5, %s960_s17 }
 0x547   :  { %v780_v7 = vpop.eup %779 }
 0x548   :  { %v294_v8 = vadd.f32 1.0, %v780_v7 }
 0x54a   :  { %781 = vrcp.f32 %v294_v8  ;;  %v306_v16 = vand.u32 2147483648, %v294_v8  ;;  %vm300_vm10 = vweird.f32 %v294_v8  ;;  %v304_v17 = vand.u32 2147483647, %v294_v8 }
 0x54c   :  { %v307_v19 = vor.u32 1.1754944e-38, %v306_v16  ;;  %vm305_vm12 = vcmp.eq.f32.partialorder %v304_v17, 8.507059e+37 }
 0x550   :  { %v782_v9 = vpop.eup %781 }
 0x551   :  { %v296_v11 = vmul.f32 %v782_v9, %v294_v8  ;;  %vm301_vm9 = vweird.f32 %v782_v9 }
 0x552   :  { %vm302_vm11 = vmor %vm300_vm10, %vm301_vm9 }
 0x553   :  { %v297_v12 = vsub.f32 1.0, %v296_v11 }
 0x555   :  { %v298_v14 = vmul.f32 %v782_v9, %v297_v12 }
 0x557   :  { %v299_v15 = vadd.f32 %v782_v9, %v298_v14 }
 0x559   :  { %v303_v18 = vsel %vm302_vm11, %v782_v9, %v299_v15 }
 0x55a   :  { %v308_v21 = vsel %vm305_vm12, %v307_v19, %v303_v18 }
 0x55b   :  { %v314_v24 = vmul.f32 %v312_v23, %v308_v21 }
 0x5a0   :  { %v317_v20 = vpop.permute.xlu2 %316 }
 0x5a1   :  { %v319_v22 = vmul.f32 %v317_v20, %v308_v21 }
 0x5a3   :  { %321 = vrot.lane.b32.xlu0 %v319_v22, %s961_s3 }
 0x615   :  { %v322_v25 = vpop.permute.xlu0 %321 }
 0x616   :  { %v324_v26 = vadd.f32 %v322_v25, %v314_v24 }
 0x618   :  { %783 = vtanh.f32 %v324_v26  ;;  %v382_v50 = vrot.slane %v324_v26, 6 }
 0x61e   :  { %v784_v27 = vpop.eup %783 }
 0x61f   :  { %327 = vrot.lane.b32.xlu1 %v784_v27, %s960_s17 }
 0x691   :  { %v328_v28 = vpop.permute.xlu1 %327 }
 0x692   :  { %v330_v29 = vmul.f32 %v328_v28, %v308_v21 }
 0x694   :  { %v332_v30 = vrot.slane %v330_v29, 4 }
 0x696   :  { %333 = vrot.lane.b32.xlu2 %v332_v30, %s961_s3 }
 0x6f0   :  { %v334_v31 = vpop.permute.xlu2 %333 }
 0x6f1   :  { %738 = vmatmul.msk.f32.vlgmr.msrb.gmra.mxu1 %vm97_vm0, %v334_v31 }
 0x76e   :  { %v354_v32 = vpop.f32.mrf.mxu1 }
 0x76f   :  { %v358_v33 = vrot.slane %v354_v32, 2 }
 0x771   :  { %v360_v34 = vadd.f32 %v358_v33, %v1017_v13 }
 0x773   :  { %785 = vtanh.f32 %v360_v34  ;;  %v739_v36 = vmul.f32 -1.442695, %v360_v34 }
 0x775   :  { %787 = vpow2.f32 %v739_v36 }
 0x779   :  { %v786_v35 = vpop.eup %785 }
 0x77a   :  { %386 = vrot.lane.b32.xlu0 %v786_v35, %s960_s17 }
 0x77b   :  { %v788_v37 = vpop.eup %787 }
 0x77c   :  { %v364_v38 = vadd.f32 1.0, %v788_v37 }
 0x77e   :  { %789 = vrcp.f32 %v364_v38  ;;  %v376_v44 = vand.u32 2147483648, %v364_v38  ;;  %vm370_vm14 = vweird.f32 %v364_v38  ;;  %v374_v45 = vand.u32 2147483647, %v364_v38 }
 0x780   :  { %v377_v46 = vor.u32 1.1754944e-38, %v376_v44  ;;  %vm375_vm1 = vcmp.eq.f32.partialorder %v374_v45, 8.507059e+37 }
 0x784   :  { %v790_v39 = vpop.eup %789 }
 0x785   :  { %v366_v40 = vmul.f32 %v790_v39, %v364_v38  ;;  %vm371_vm13 = vweird.f32 %v790_v39 }
 0x786   :  { %vm372_vm15 = vmor %vm370_vm14, %vm371_vm13 }
 0x787   :  { %v367_v41 = vsub.f32 1.0, %v366_v40 }
 0x789   :  { %v368_v42 = vmul.f32 %v790_v39, %v367_v41 }
 0x78b   :  { %v369_v43 = vadd.f32 %v790_v39, %v368_v42 }
 0x78d   :  { %v373_v13 = vsel %vm372_vm15, %v790_v39, %v369_v43 }
 0x78e   :  { %v378_v48 = vsel %vm375_vm1, %v377_v46, %v373_v13 }
 0x78f   :  { %v384_v51 = vmul.f32 %v382_v50, %v378_v48 }
 0x7ec   :  { %v387_v47 = vpop.permute.xlu0 %386 }
 0x7ed   :  { %v389_v49 = vmul.f32 %v387_v47, %v378_v48 }
 0x7ef   :  { %391 = vrot.lane.b32.xlu1 %v389_v49, %s961_s3 }
 0x861   :  { %v392_v52 = vpop.permute.xlu1 %391 }
 0x862   :  { %v394_v53 = vadd.f32 %v392_v52, %v384_v51 }
 0x864   :  { %791 = vtanh.f32 %v394_v53  ;;  %v449_v17 = vrot.slane %v394_v53, 6 }
 0x86a   :  { %v792_v54 = vpop.eup %791 }
 0x86b   :  { %397 = vrot.lane.b32.xlu2 %v792_v54, %s960_s17 }
 0x8c5   :  { %v398_v55 = vpop.permute.xlu2 %397 }
 0x8c6   :  { %v400_v56 = vmul.f32 %v398_v55, %v378_v48 }
 0x8c8   :  { %v402_v57 = vrot.slane %v400_v56, 6 }
 0x8ca   :  { %403 = vrot.lane.b32.xlu0 %v402_v57, %s961_s3 }
 0x93c   :  { %v404_v59 = vpop.permute.xlu0 %403 }
 0x93d   :  { %740 = vmatmul.msk.f32.vlgmr.msrb.gmra.mxu2 %vm97_vm0, %v404_v59 }
 0x9c0   :  { %v424_v62 = vpop.f32.mrf.mxu2 }
 0x9c1   :  { %v427_v63 = vadd.f32 %v424_v62, %v1045_v61 }
 0x9c3   :  { %793 = vtanh.f32 %v427_v63  ;;  %v741_v1 = vmul.f32 -1.442695, %v427_v63 }
 0x9c5   :  { %795 = vpow2.f32 %v741_v1 }
 0x9c9   :  { %v794_v0 = vpop.eup %793 }
 0x9ca   :  { %453 = vrot.lane.b32.xlu1 %v794_v0, %s960_s17 }
 0x9cb   :  { %v796_v2 = vpop.eup %795 }
 0x9cc   :  { %v431_v3 = vadd.f32 1.0, %v796_v2 }
 0x9ce   :  { %797 = vrcp.f32 %v431_v3  ;;  %v443_v10 = vand.u32 2147483648, %v431_v3  ;;  %vm437_vm3 = vweird.f32 %v431_v3  ;;  %v441_v9 = vand.u32 2147483647, %v431_v3 }
 0x9d0   :  { %v444_v12 = vor.u32 1.1754944e-38, %v443_v10  ;;  %vm442_vm5 = vcmp.eq.f32.partialorder %v441_v9, 8.507059e+37 }
 0x9d4   :  { %v798_v4 = vpop.eup %797 }
 0x9d5   :  { %v433_v5 = vmul.f32 %v798_v4, %v431_v3  ;;  %vm438_vm2 = vweird.f32 %v798_v4 }
 0x9d6   :  { %vm439_vm4 = vmor %vm437_vm3, %vm438_vm2 }
 0x9d7   :  { %v434_v6 = vsub.f32 1.0, %v433_v5 }
 0x9d9   :  { %v435_v7 = vmul.f32 %v798_v4, %v434_v6 }
 0x9db   :  { %v436_v8 = vadd.f32 %v798_v4, %v435_v7 }
 0x9dd   :  { %v440_v11 = vsel %vm439_vm4, %v798_v4, %v436_v8 }
 0x9de   :  { %v445_v15 = vsel %vm442_vm5, %v444_v12, %v440_v11 }
 0x9df   :  { %v451_v18 = vmul.f32 %v449_v17, %v445_v15 }
 0xa3c   :  { %v454_v14 = vpop.permute.xlu1 %453 }
 0xa3d   :  { %v456_v16 = vmul.f32 %v454_v14, %v445_v15 }
 0xa3f   :  { %458 = vrot.lane.b32.xlu2 %v456_v16, %s961_s3 }
 0xa99   :  { %v459_v19 = vpop.permute.xlu2 %458 }
 0xa9a   :  { %v461_v20 = vadd.f32 %v459_v19, %v451_v18 }
 0xa9c   :  { %799 = vtanh.f32 %v461_v20  ;;  %v518_v44 = vrot.slane %v461_v20, 6 }
 0xaa2   :  { %v800_v21 = vpop.eup %799 }
 0xaa3   :  { %464 = vrot.lane.b32.xlu0 %v800_v21, %s960_s17 }
 0xb15   :  { %v465_v22 = vpop.permute.xlu0 %464 }
 0xb16   :  { %v467_v23 = vmul.f32 %v465_v22, %v445_v15 }
 0xb18   :  { %469 = vrot.lane.b32.xlu1 %v467_v23, %s961_s3 }
 0xb8a   :  { %v470_v24 = vpop.permute.xlu1 %469 }
 0xb8b   :  { %742 = vmatmul.msk.f32.vlgmr.msrb.gmra.mxu3 %vm97_vm0, %v470_v24 }
 0xc0e   :  { %v490_v25 = vpop.f32.mrf.mxu3 }
 0xc0f   :  { %v494_v26 = vrot.slane %v490_v25, 6 }
 0xc11   :  { %v496_v27 = vadd.f32 %v494_v26, %v1045_v61 }
 0xc13   :  { %801 = vtanh.f32 %v496_v27  ;;  %v743_v29 = vmul.f32 -1.442695, %v496_v27 }
 0xc15   :  { %803 = vpow2.f32 %v743_v29 }
 0xc19   :  { %v802_v28 = vpop.eup %801 }
 0xc1a   :  { %522 = vrot.lane.b32.xlu2 %v802_v28, %s960_s17 }
 0xc1b   :  { %v804_v30 = vpop.eup %803 }
 0xc1c   :  { %v500_v31 = vadd.f32 1.0, %v804_v30 }
 0xc1e   :  { %805 = vrcp.f32 %v500_v31  ;;  %v512_v37 = vand.u32 2147483648, %v500_v31  ;;  %vm506_vm7 = vweird.f32 %v500_v31  ;;  %v510_v38 = vand.u32 2147483647, %v500_v31 }
 0xc20   :  { %v513_v40 = vor.u32 1.1754944e-38, %v512_v37  ;;  %vm511_vm9 = vcmp.eq.f32.partialorder %v510_v38, 8.507059e+37 }
 0xc24   :  { %v806_v32 = vpop.eup %805 }
 0xc25   :  { %v502_v33 = vmul.f32 %v806_v32, %v500_v31  ;;  %vm507_vm6 = vweird.f32 %v806_v32 }
 0xc26   :  { %vm508_vm8 = vmor %vm506_vm7, %vm507_vm6 }
 0xc27   :  { %v503_v34 = vsub.f32 1.0, %v502_v33 }
 0xc29   :  { %v504_v35 = vmul.f32 %v806_v32, %v503_v34 }
 0xc2b   :  { %v505_v36 = vadd.f32 %v806_v32, %v504_v35 }
 0xc2d   :  { %v509_v39 = vsel %vm508_vm8, %v806_v32, %v505_v36 }
 0xc2e   :  { %v514_v42 = vsel %vm511_vm9, %v513_v40, %v509_v39 }
 0xc2f   :  { %v520_v45 = vmul.f32 %v518_v44, %v514_v42  ;;  %v677_v44 = vld [vmem:[#allocation8] sm:$0xff] }
 0xc74   :  { %v523_v41 = vpop.permute.xlu2 %522 }
 0xc75   :  { %v525_v43 = vmul.f32 %v523_v41, %v514_v42  ;;  %v680_v41 = vld [vmem:[#allocation8 + $0x18] sm:$0xff] }
 0xc76   :  { %703 = vmatpush.msra.mxu2 %v680_v41 }
 0xc77   :  { %527 = vrot.lane.b32.xlu0 %v525_v43, %s961_s3  ;;  %v678_v43 = vld [vmem:[#allocation8 + $0x8] sm:$0xff] }
 0xce9   :  { %v528_v13 = vpop.permute.xlu0 %527 }
 0xcea   :  { %v530_v46 = vadd.f32 %v528_v13, %v520_v45 }
 0xcec   :  { %807 = vtanh.f32 %v530_v46  ;;  %v588_v8 = vrot.slane %v530_v46, 6 }
 0xcf2   :  { %v808_v47 = vpop.eup %807 }
 0xcf3   :  { %533 = vrot.lane.b32.xlu1 %v808_v47, %s960_s17 }
 0xd65   :  { %v534_v48 = vpop.permute.xlu1 %533 }
 0xd66   :  { %v536_v49 = vmul.f32 %v534_v48, %v514_v42  ;;  %v679_v42 = vld [vmem:[#allocation8 + $0x10] sm:$0xff] }
 0xd67   :  { %704 = vmatpush.msra.mxu2 %v679_v42  ;;  %v760_v48 = vld [vmem:[%s1082_s5] ss:$0 sm:$0xff] }
 0xd68   :  { %v538_v50 = vrot.slane %v536_v49, 2 }
 0xd69   :  { %705 = vmatpush.msra.mxu2 %v678_v43 }
 0xd6a   :  { %539 = vrot.lane.b32.xlu2 %v538_v50, %s961_s3 }
 0xd6b   :  { %706 = vmatpush.msra.mxu2 %v677_v44 }
 0xdc4   :  { %v540_v51 = vpop.permute.xlu2 %539 }
 0xdc5   :  { %744 = vmatmul.msk.f32.vlgmr.msrb.gmra.mxu0 %vm97_vm0, %v540_v51 }
 0xe42   :  { %v560_v52 = vpop.f32.mrf.mxu0 }
 0xe43   :  { %v564_v53 = vrot.slane %v560_v52, 4 }
 0xe45   :  { %v566_v54 = vadd.f32 %v564_v53, %v1045_v61 }
 0xe47   :  { %809 = vtanh.f32 %v566_v54  ;;  %v745_v56 = vmul.f32 -1.442695, %v566_v54 }
 0xe49   :  { %811 = vpow2.f32 %v745_v56 }
 0xe4d   :  { %v810_v55 = vpop.eup %809 }
 0xe4e   :  { %592 = vrot.lane.b32.xlu0 %v810_v55, %s960_s17 }
 0xe4f   :  { %v812_v57 = vpop.eup %811 }
 0xe50   :  { %v570_v58 = vadd.f32 1.0, %v812_v57 }
 0xe52   :  { %813 = vrcp.f32 %v570_v58  ;;  %v582_v1 = vand.u32 2147483648, %v570_v58  ;;  %vm576_vm11 = vweird.f32 %v570_v58  ;;  %v580_v2 = vand.u32 2147483647, %v570_v58 }
 0xe54   :  { %v583_v4 = vor.u32 1.1754944e-38, %v582_v1  ;;  %vm581_vm13 = vcmp.eq.f32.partialorder %v580_v2, 8.507059e+37 }
 0xe58   :  { %v814_v59 = vpop.eup %813 }
 0xe59   :  { %v572_v60 = vmul.f32 %v814_v59, %v570_v58  ;;  %vm577_vm10 = vweird.f32 %v814_v59 }
 0xe5a   :  { %vm578_vm12 = vmor %vm576_vm11, %vm577_vm10 }
 0xe5b   :  { %v573_v62 = vsub.f32 1.0, %v572_v60 }
 0xe5d   :  { %v574_v63 = vmul.f32 %v814_v59, %v573_v62 }
 0xe5f   :  { %v575_v0 = vadd.f32 %v814_v59, %v574_v63 }
 0xe61   :  { %v579_v3 = vsel %vm578_vm12, %v814_v59, %v575_v0 }
 0xe62   :  { %v584_v6 = vsel %vm581_vm13, %v583_v4, %v579_v3 }
 0xe63   :  { %v590_v10 = vmul.f32 %v588_v8, %v584_v6 }
 0xec0   :  { %v593_v5 = vpop.permute.xlu0 %592 }
 0xec1   :  { %v595_v7 = vmul.f32 %v593_v5, %v584_v6 }
 0xec3   :  { %597 = vrot.lane.b32.xlu1 %v595_v7, %s961_s3 }
 0xf35   :  { %v598_v9 = vpop.permute.xlu1 %597 }
 0xf36   :  { %v600_v11 = vadd.f32 %v598_v9, %v590_v10 }
 0xf38   :  { %815 = vtanh.f32 %v600_v11  ;;  %v658_v36 = vrot.slane %v600_v11, 6 }
 0xf3e   :  { %v816_v12 = vpop.eup %815 }
 0xf3f   :  { %603 = vrot.lane.b32.xlu2 %v816_v12, %s960_s17 }
 0xf99   :  { %v604_v14 = vpop.permute.xlu2 %603 }
 0xf9a   :  { %v606_v15 = vmul.f32 %v604_v14, %v584_v6 }
 0xf9c   :  { %v608_v16 = vrot.slane %v606_v15, 4 }
 0xf9e   :  { %609 = vrot.lane.b32.xlu0 %v608_v16, %s961_s3 }
0x1010   :  { %v610_v17 = vpop.permute.xlu0 %609 }
0x1011   :  { %746 = vmatmul.msk.f32.vlgmr.msra.gmra.mxu1 %vm97_vm0, %v610_v17 }
0x108e   :  { %v630_v18 = vpop.f32.mrf.mxu1 }
0x108f   :  { %v634_v19 = vrot.slane %v630_v18, 2 }
0x1091   :  { %v636_v20 = vadd.f32 %v634_v19, %v1045_v61 }
0x1093   :  { %817 = vtanh.f32 %v636_v20  ;;  %v747_v22 = vmul.f32 -1.442695, %v636_v20 }
0x1095   :  { %819 = vpow2.f32 %v747_v22 }
0x1099   :  { %v818_v21 = vpop.eup %817 }
0x109a   :  { %662 = vrot.lane.b32.xlu1 %v818_v21, %s960_s17 }
0x109b   :  { %v820_v23 = vpop.eup %819 }
0x109c   :  { %v640_v24 = vadd.f32 1.0, %v820_v23 }
0x109e   :  { %821 = vrcp.f32 %v640_v24  ;;  %v652_v30 = vand.u32 2147483648, %v640_v24  ;;  %vm646_vm15 = vweird.f32 %v640_v24  ;;  %v650_v31 = vand.u32 2147483647, %v640_v24 }
0x10a0   :  { %v653_v32 = vor.u32 1.1754944e-38, %v652_v30  ;;  %vm651_vm2 = vcmp.eq.f32.partialorder %v650_v31, 8.507059e+37 }
0x10a4   :  { %v822_v25 = vpop.eup %821 }
0x10a5   :  { %v642_v26 = vmul.f32 %v822_v25, %v640_v24  ;;  %vm647_vm14 = vweird.f32 %v822_v25 }
0x10a6   :  { %vm648_vm1 = vmor %vm646_vm15, %vm647_vm14 }
0x10a7   :  { %v643_v27 = vsub.f32 1.0, %v642_v26 }
0x10a9   :  { %v644_v28 = vmul.f32 %v822_v25, %v643_v27 }
0x10ab   :  { %v645_v29 = vadd.f32 %v822_v25, %v644_v28 }
0x10ad   :  { %v649_v61 = vsel %vm648_vm1, %v822_v25, %v645_v29 }
0x10ae   :  { %v654_v34 = vsel %vm651_vm2, %v653_v32, %v649_v61 }
0x10af   :  { %v660_v37 = vmul.f32 %v658_v36, %v654_v34 }
0x110c   :  { %v663_v33 = vpop.permute.xlu1 %662 }
0x110d   :  { %v665_v35 = vmul.f32 %v663_v33, %v654_v34 }
0x110f   :  { %667 = vrot.lane.b32.xlu2 %v665_v35, %s961_s3 }
0x1169   :  { %v668_v38 = vpop.permute.xlu2 %667 }
0x116a   :  { %v670_v39 = vadd.f32 %v668_v38, %v660_v37 }
0x116c   :  { %823 = vtanh.f32 %v670_v39 }
0x1172   :  { %v824_v40 = vpop.eup %823 }
0x1173   :  { %673 = vrot.lane.b32.xlu0 %v824_v40, %s960_s17 }
0x11e5   :  { %v674_v45 = vpop.permute.xlu0 %673 }
0x11e6   :  { %v676_v13 = vmul.f32 %v674_v45, %v654_v34 }
0x11e8   :  { %v686_v46 = vrot.slane %v676_v13, 6 }
0x11ea   :  { %687 = vrot.lane.b32.xlu1 %v686_v46, %s961_s3 }
0x125c   :  { %v688_v47 = vpop.permute.xlu1 %687 }
0x125d   :  { %748 = vmatmul.msk.f32.vlgmr.msra.gmra.mxu2 %vm97_vm0, %v688_v47 }
0x12e0   :  { %v708_v49 = vpop.f32.mrf.mxu2 }
0x12e1   :  { %v709_v50 = vadd.f32 %v760_v48, %v708_v49 }
0x12e3   :  { %711 = vst [vmem:[#allocation10] sm:$0x3] %v709_v50 }
0x12e4   :  { %722 = dma.vmem_to_hbm [thread:$0]  %s718_s21, 32, %s720_s24, [#allocation4]  }
0x12e5   :  { %951 = dma.done.wait [#allocation4], 32  }
0x12e6   :  { %952 = vsyncadd [#allocation4], 4294967264 }
0x12e7   :  { %727 = vsyncpa [#allocation3], 1 }
0x12e8   :  { %728 = vsyncpa [#allocation6], 1 }
0x12e9   :  { %729 = vsyncpa [#allocation9], 1 }
0x12ea   :  { %730 = vsyncpa [#allocation4], 1 }

</bundles_post_ra>
